<compile_context>
chip_gen: v7x
topology: tpu7x:2x2x1
jax: 0.10.0
libtpu: 0.0.40
codegen_flags: <defaults>
</compile_context>

<pallas_src>
import math

import jax
import jax.numpy as jnp
from jax.experimental import pallas as pl
from jax.experimental.pallas import tpu as pltpu  # noqa: F401  (TPU backend)

# ---------------- configuration (small, consistent with the module) ----------
B = 2            # batch
T = 8            # sequence length
D = 32           # dim_model
H = 4            # num_heads
HD = D // H      # head dim
F = 64           # dim_ffw
N = B * T        # packed tokens
LANE = 128       # lane-dense padding width for the fused slabs
EPS = 1e-5       # norm_eps
NEG_INF = -1e30  # finite -> softmax of a fully-masked row stays NaN-free
SCALE = 1.0 / math.sqrt(HD)

assert 3 * D <= LANE and 4 * D <= LANE and 2 * D + F <= LANE


def _encoder_layer_kernel(x_ref, abias_ref, wqkv_ref, wo_ref, w1_ref, w2_ref,
                          slab_ref, o_ref):
    """Whole batch in one invocation (no grid). Everything lives in VMEM.

    x_ref     : (N, D)      token-packed features (N = B*T)
    abias_ref : (N, N)      additive attention mask (0 attend / NEG_INF),
                            block-diagonal over batches x key padding
    wqkv_ref  : (D, LANE)   fused [Wq*SCALE | Wk | Wv | 0] projection slab
    wo_ref    : (D, D)      original output projection
    w1_ref    : (D, F)   w2_ref : (F, D)
    slab_ref  : (3, LANE)   row0 = [bq*SCALE|bk|bv|0]
                            row1 = [bo|gamma1|beta1|gamma2]
                            row2 = [beta2|b2|b1]
    """
    x = x_ref[...]                              # (N, D) f32
    abias = abias_ref[...]                      # (N, N)
    slab = slab_ref[...]                        # (3, LANE)
    bqkv = slab[0]                              # (LANE,)
    bo, g1 = slab[1, 0:D], slab[1, D:2 * D]
    be1, g2 = slab[1, 2 * D:3 * D], slab[1, 3 * D:4 * D]
    be2, b2 = slab[2, 0:D], slab[2, D:2 * D]
    b1 = slab[2, 2 * D:2 * D + F]               # (F,)

    def layer_norm(v, gamma, beta):
        mu = jnp.mean(v, axis=-1, keepdims=True)
        c = v - mu
        var = jnp.mean(c * c, axis=-1, keepdims=True)
        return c * jax.lax.rsqrt(var + EPS) * gamma + beta

    # ---------------- self-attention block (pre-norm) ------------------------
    residual = x
    xn = layer_norm(x, g1, be1)                                   # (N, D)

    # single fused, lane-dense projection; SCALE already folded into q cols/bias
    qkv = jnp.dot(xn, wqkv_ref[...],
                  preferred_element_type=jnp.float32) + bqkv      # (N, LANE)
    q = qkv[:, 0:D]            # (N, D)  == q / sqrt(HD)
    k = qkv[:, D:2 * D]        # (N, D)
    v = qkv[:, 2 * D:3 * D]    # (N, D)

    # head split via static lane slices; K transposed once so the score matmul
    # is a plain last x first contraction (no per-head implicit transposes).
    qh = jnp.stack([q[:, h * HD:(h + 1) * HD] for h in range(H)])   # (H, N, HD)
    vh = jnp.stack([v[:, h * HD:(h + 1) * HD] for h in range(H)])   # (H, N, HD)
    kTh = k.T.reshape(H, HD, N)                                     # (H, HD, N)

    s = jnp.einsum('hnf,hfm->hnm', qh, kTh,
                   preferred_element_type=jnp.float32)              # (H, N, N)
    s = s + abias[None]                     # mask: single head-invariant add
    s = s - jnp.max(s, axis=-1, keepdims=True)
    e = jnp.exp(s)
    denom = jnp.sum(e, axis=-1, keepdims=True)                      # (H, N, 1)
    ctx = jnp.einsum('hnm,hmf->hnf', e, vh,
                     preferred_element_type=jnp.float32)            # (H, N, HD)
    # Normalize AFTER p@v (N*HD muls per head); reciprocal on the EUP slot.
    ctx = ctx * pl.reciprocal(denom, approx=True)

    # Concat heads back to (N, D); ONE output-projection matmul vs original Wo.
    ctx_nd = jnp.concatenate([ctx[h] for h in range(H)], axis=-1)   # (N, D)
    attn = jnp.dot(ctx_nd, wo_ref[...],
                   preferred_element_type=jnp.float32) + bo
    x = attn + residual                       # dropout == identity (eval)

    # ---------------- feed-forward block (pre-norm) --------------------------
    residual = x
    xn = layer_norm(x, g2, be2)
    h1 = jnp.dot(xn, w1_ref[...], preferred_element_type=jnp.float32) + b1
    h1 = jnp.maximum(h1, 0.0)                 # relu
    ffw = jnp.dot(h1, w2_ref[...], preferred_element_type=jnp.float32) + b2

    # TODO(synk): a (N*D/128, 128) lane-dense store view could replace this
    #             (N, 32) masked store on v5e; the in-kernel relayout costs
    #             roughly what the masked vst saves at N=16, so skipped.
    o_ref[...] = (ffw + residual).astype(o_ref.dtype)


def transformer_encoder_layer(feature, san_mask, params):
    """feature: (B, T, D) f32; san_mask: (B, T, T) f32 (1=attend); params dict."""
    p = params

    # ------- host-side layout plumbing (no compute hoisting) -----------------
    x_packed = feature.reshape(N, D)

    # Block-diagonal additive mask over packed tokens:
    #   abias[i, j] = 0 if tokens i, j belong to the same batch AND san_mask
    #   allows attending, else NEG_INF.  Cross-batch keys get exp(.) == 0, so
    #   packing B into the token axis is exact.
    add = jnp.where(san_mask > 0, 0.0, NEG_INF)                # (B, T, T)
    bi = jnp.arange(N) // T
    ti = jnp.arange(N) % T
    vals = add[bi[:, None], ti[:, None], ti[None, :]]          # (N, N)
    abias = jnp.where(bi[:, None] == bi[None, :], vals, NEG_INF).astype(jnp.float32)

    # Fused, lane-dense (D, 128) qkv weight slab; attention scale folded into q.
    wqkv = jnp.zeros((D, LANE), jnp.float32)
    wqkv = (wqkv.at[:, 0:D].set(p["wq"] * SCALE)
                 .at[:, D:2 * D].set(p["wk"])
                 .at[:, 2 * D:3 * D].set(p["wv"]))

    # All small vectors packed into one lane-dense (3, 128) slab.
    slab = jnp.zeros((3, LANE), jnp.float32)
    slab = (slab.at[0, 0:D].set(p["bq"] * SCALE)
                .at[0, D:2 * D].set(p["bk"])
                .at[0, 2 * D:3 * D].set(p["bv"])
                .at[1, 0:D].set(p["bo"])
                .at[1, D:2 * D].set(p["g1"])
                .at[1, 2 * D:3 * D].set(p["be1"])
                .at[1, 3 * D:4 * D].set(p["g2"])
                .at[2, 0:D].set(p["be2"])
                .at[2, D:2 * D].set(p["b2"])
                .at[2, 2 * D:2 * D + F].set(p["b1"]))

    out = pl.pallas_call(
        _encoder_layer_kernel,
        out_shape=jax.ShapeDtypeStruct((N, D), jnp.float32),
    )(x_packed, abias, wqkv, p["wo"], p["w1"], p["w2"], slab)
    return out.reshape(B, T, D)


# ---------------- pure-JAX reference for a correctness check -----------------
def _reference(feature, san_mask, p):
    def ln(v, g, b):
        mu = jnp.mean(v, axis=-1, keepdims=True)
        var = jnp.mean((v - mu) ** 2, axis=-1, keepdims=True)
        return (v - mu) / jnp.sqrt(var + EPS) * g + b

    x = feature
    residual = x
    xn = ln(x, p["g1"], p["be1"])
    q = xn @ p["wq"] + p["bq"]
    k = xn @ p["wk"] + p["bk"]
    v = xn @ p["wv"] + p["bv"]
    q = q.reshape(B, T, H, HD).transpose(0, 2, 1, 3)
    k = k.reshape(B, T, H, HD).transpose(0, 2, 1, 3)
    v = v.reshape(B, T, H, HD).transpose(0, 2, 1, 3)
    s = jnp.einsum("bhqd,bhkd->bhqk", q, k) / math.sqrt(HD)
    s = jnp.where(san_mask[:, None, :, :] > 0, s, NEG_INF)
    pattn = jax.nn.softmax(s, axis=-1)
    attn = jnp.einsum("bhqk,bhkd->bhqd", pattn, v).transpose(0, 2, 1, 3).reshape(B, T, D)
    attn = attn @ p["wo"] + p["bo"]
    x = attn + residual
    residual = x
    xn = ln(x, p["g2"], p["be2"])
    ffw = jnp.maximum(xn @ p["w1"] + p["b1"], 0.0) @ p["w2"] + p["b2"]
    return ffw + residual


def _init_params(key):
    ks = jax.random.split(key, 16)
    s = 0.02
    return {
        "wq": jax.random.normal(ks[0], (D, D), jnp.float32) * s,
        "bq": jax.random.normal(ks[1], (D,), jnp.float32) * s,
        "wk": jax.random.normal(ks[2], (D, D), jnp.float32) * s,
        "bk": jax.random.normal(ks[3], (D,), jnp.float32) * s,
        "wv": jax.random.normal(ks[4], (D, D), jnp.float32) * s,
        "bv": jax.random.normal(ks[5], (D,), jnp.float32) * s,
        "wo": jax.random.normal(ks[6], (D, D), jnp.float32) * s,
        "bo": jax.random.normal(ks[7], (D,), jnp.float32) * s,
        "g1": 1.0 + jax.random.normal(ks[8], (D,), jnp.float32) * s,
        "be1": jax.random.normal(ks[9], (D,), jnp.float32) * s,
        "w1": jax.random.normal(ks[10], (D, F), jnp.float32) * s,
        "b1": jax.random.normal(ks[11], (F,), jnp.float32) * s,
        "w2": jax.random.normal(ks[12], (F, D), jnp.float32) * s,
        "b2": jax.random.normal(ks[13], (D,), jnp.float32) * s,
        "g2": 1.0 + jax.random.normal(ks[14], (D,), jnp.float32) * s,
        "be2": jax.random.normal(ks[15], (D,), jnp.float32) * s,
    }


if __name__ == "__main__":
    key = jax.random.PRNGKey(0)
    kx, kp = jax.random.split(key)

    feature = jax.random.normal(kx, (B, T, D), jnp.float32)

    # key-padding mask: 1 = valid token, 0 = padded (second example has 2 pads)
    pad_mask = jnp.ones((B, T), jnp.float32).at[1, T - 2:].set(0.0)
    # make_san_mask(src_key_padding_mask): san_mask[b, q, k] = pad_mask[b, k]
    san_mask = jnp.broadcast_to(pad_mask[:, None, :], (B, T, T)).astype(jnp.float32)

    params = _init_params(kp)

    out = jax.jit(transformer_encoder_layer)(feature, san_mask, params)
    out = jax.block_until_ready(out)

    ref = _reference(feature, san_mask, params)
    assert out.shape == (B, T, D)
    err = jnp.max(jnp.abs(out - ref))
    assert jnp.allclose(out, ref, atol=1e-4, rtol=1e-4), f"max err {err}"

    print("KERNEL_OK")
</pallas_src>

<mosaic_0001>
module attributes {stable_mosaic.version = 11 : i64} {
  func.func @_encoder_layer_kernel(%arg0: memref<16x32xf32, #tpu.memory_space<vmem>>, %arg1: memref<16x16xf32, #tpu.memory_space<vmem>>, %arg2: memref<32x128xf32, #tpu.memory_space<vmem>>, %arg3: memref<32x32xf32, #tpu.memory_space<vmem>>, %arg4: memref<32x64xf32, #tpu.memory_space<vmem>>, %arg5: memref<64x32xf32, #tpu.memory_space<vmem>>, %arg6: memref<3x128xf32, #tpu.memory_space<vmem>>, %arg7: memref<16x32xf32, #tpu.memory_space<vmem>>) attributes {dimension_semantics = [], scalar_prefetch = 0 : i64, scratch_operands = 0 : i64, tpu.core_type = #tpu.core_type<tc>} {
    %c0 = arith.constant 0 : index
    %c0_0 = arith.constant 0 : index
    %0 = vector.load %arg0[%c0, %c0_0] : memref<16x32xf32, #tpu.memory_space<vmem>>, vector<16x32xf32>
    %c0_1 = arith.constant 0 : index
    %c0_2 = arith.constant 0 : index
    %1 = vector.load %arg1[%c0_1, %c0_2] : memref<16x16xf32, #tpu.memory_space<vmem>>, vector<16x16xf32>
    %c0_3 = arith.constant 0 : index
    %c0_4 = arith.constant 0 : index
    %2 = vector.load %arg6[%c0_3, %c0_4] : memref<3x128xf32, #tpu.memory_space<vmem>>, vector<3x128xf32>
    %3 = vector.extract_strided_slice %2 {offsets = [0, 0], sizes = [1, 128], strides = [1, 1]} : vector<3x128xf32> to vector<1x128xf32>
    %4 = vector.shape_cast %3 : vector<1x128xf32> to vector<128xf32>
    %5 = vector.extract_strided_slice %2 {offsets = [1, 0], sizes = [1, 32], strides = [1, 1]} : vector<3x128xf32> to vector<1x32xf32>
    %6 = vector.shape_cast %5 : vector<1x32xf32> to vector<32xf32>
    %7 = vector.extract_strided_slice %2 {offsets = [1, 32], sizes = [1, 32], strides = [1, 1]} : vector<3x128xf32> to vector<1x32xf32>
    %8 = vector.shape_cast %7 : vector<1x32xf32> to vector<32xf32>
    %9 = vector.extract_strided_slice %2 {offsets = [1, 64], sizes = [1, 32], strides = [1, 1]} : vector<3x128xf32> to vector<1x32xf32>
    %10 = vector.shape_cast %9 : vector<1x32xf32> to vector<32xf32>
    %11 = vector.extract_strided_slice %2 {offsets = [1, 96], sizes = [1, 32], strides = [1, 1]} : vector<3x128xf32> to vector<1x32xf32>
    %12 = vector.shape_cast %11 : vector<1x32xf32> to vector<32xf32>
    %13 = vector.extract_strided_slice %2 {offsets = [2, 0], sizes = [1, 32], strides = [1, 1]} : vector<3x128xf32> to vector<1x32xf32>
    %14 = vector.shape_cast %13 : vector<1x32xf32> to vector<32xf32>
    %15 = vector.extract_strided_slice %2 {offsets = [2, 32], sizes = [1, 32], strides = [1, 1]} : vector<3x128xf32> to vector<1x32xf32>
    %16 = vector.shape_cast %15 : vector<1x32xf32> to vector<32xf32>
    %17 = vector.extract_strided_slice %2 {offsets = [2, 64], sizes = [1, 64], strides = [1, 1]} : vector<3x128xf32> to vector<1x64xf32>
    %18 = vector.shape_cast %17 : vector<1x64xf32> to vector<64xf32>
    %cst = arith.constant dense<0.000000e+00> : vector<16xf32>
    %19 = vector.multi_reduction <add>, %0, %cst [1] : vector<16x32xf32> to vector<16xf32>
    %20 = vector.shape_cast %19 : vector<16xf32> to vector<16x1xf32>
    %cst_5 = arith.constant 3.200000e+01 : f32
    %21 = vector.broadcast %cst_5 : f32 to vector<16x1xf32>
    %22 = arith.divf %20, %21 : vector<16x1xf32>
    %23 = vector.broadcast %22 : vector<16x1xf32> to vector<16x32xf32>
    %24 = arith.subf %0, %23 : vector<16x32xf32>
    %25 = arith.mulf %24, %24 : vector<16x32xf32>
    %cst_6 = arith.constant dense<0.000000e+00> : vector<16xf32>
    %26 = vector.multi_reduction <add>, %25, %cst_6 [1] : vector<16x32xf32> to vector<16xf32>
    %27 = vector.shape_cast %26 : vector<16xf32> to vector<16x1xf32>
    %cst_7 = arith.constant 3.200000e+01 : f32
    %28 = vector.broadcast %cst_7 : f32 to vector<16x1xf32>
    %29 = arith.divf %27, %28 : vector<16x1xf32>
    %cst_8 = arith.constant 9.99999974E-6 : f32
    %30 = vector.broadcast %cst_8 : f32 to vector<16x1xf32>
    %31 = arith.addf %29, %30 : vector<16x1xf32>
    %32 = math.rsqrt %31 : vector<16x1xf32>
    %33 = vector.broadcast %32 : vector<16x1xf32> to vector<16x32xf32>
    %34 = arith.mulf %24, %33 : vector<16x32xf32>
    %35 = vector.shape_cast %8 : vector<32xf32> to vector<1x32xf32>
    %36 = vector.broadcast %35 : vector<1x32xf32> to vector<16x32xf32>
    %37 = arith.mulf %34, %36 : vector<16x32xf32>
    %38 = vector.shape_cast %10 : vector<32xf32> to vector<1x32xf32>
    %39 = vector.broadcast %38 : vector<1x32xf32> to vector<16x32xf32>
    %40 = arith.addf %37, %39 : vector<16x32xf32>
    %c0_9 = arith.constant 0 : index
    %c0_10 = arith.constant 0 : index
    %41 = vector.load %arg2[%c0_9, %c0_10] : memref<32x128xf32, #tpu.memory_space<vmem>>, vector<32x128xf32>
    %cst_11 = arith.constant dense<0.000000e+00> : vector<16x128xf32>
    %42 = tpu.matmul %40, %41, %cst_11 {dimension_numbers = #tpu.dot_dimension_numbers<[1], [0], [0], [1], [0, 0, 1, 1], [], []>} : vector<16x32xf32>, vector<32x128xf32>, vector<16x128xf32> -> vector<16x128xf32>
    %43 = vector.shape_cast %4 : vector<128xf32> to vector<1x128xf32>
    %44 = vector.broadcast %43 : vector<1x128xf32> to vector<16x128xf32>
    %45 = arith.addf %42, %44 : vector<16x128xf32>
    %46 = vector.extract_strided_slice %45 {offsets = [0, 0], sizes = [16, 32], strides = [1, 1]} : vector<16x128xf32> to vector<16x32xf32>
    %47 = vector.extract_strided_slice %45 {offsets = [0, 32], sizes = [16, 32], strides = [1, 1]} : vector<16x128xf32> to vector<16x32xf32>
    %48 = vector.extract_strided_slice %45 {offsets = [0, 64], sizes = [16, 32], strides = [1, 1]} : vector<16x128xf32> to vector<16x32xf32>
    %49 = vector.extract_strided_slice %46 {offsets = [0, 0], sizes = [16, 8], strides = [1, 1]} : vector<16x32xf32> to vector<16x8xf32>
    %50 = vector.extract_strided_slice %46 {offsets = [0, 8], sizes = [16, 8], strides = [1, 1]} : vector<16x32xf32> to vector<16x8xf32>
    %51 = vector.extract_strided_slice %46 {offsets = [0, 16], sizes = [16, 8], strides = [1, 1]} : vector<16x32xf32> to vector<16x8xf32>
    %52 = vector.extract_strided_slice %46 {offsets = [0, 24], sizes = [16, 8], strides = [1, 1]} : vector<16x32xf32> to vector<16x8xf32>
    %53 = vector.shape_cast %49 : vector<16x8xf32> to vector<1x16x8xf32>
    %54 = vector.shape_cast %50 : vector<16x8xf32> to vector<1x16x8xf32>
    %55 = vector.shape_cast %51 : vector<16x8xf32> to vector<1x16x8xf32>
    %56 = vector.shape_cast %52 : vector<16x8xf32> to vector<1x16x8xf32>
    %57 = tpu.concatenate %53, %54, %55, %56 in 0 : vector<1x16x8xf32>, vector<1x16x8xf32>, vector<1x16x8xf32>, vector<1x16x8xf32> -> vector<4x16x8xf32>
    %58 = vector.extract_strided_slice %48 {offsets = [0, 0], sizes = [16, 8], strides = [1, 1]} : vector<16x32xf32> to vector<16x8xf32>
    %59 = vector.extract_strided_slice %48 {offsets = [0, 8], sizes = [16, 8], strides = [1, 1]} : vector<16x32xf32> to vector<16x8xf32>
    %60 = vector.extract_strided_slice %48 {offsets = [0, 16], sizes = [16, 8], strides = [1, 1]} : vector<16x32xf32> to vector<16x8xf32>
    %61 = vector.extract_strided_slice %48 {offsets = [0, 24], sizes = [16, 8], strides = [1, 1]} : vector<16x32xf32> to vector<16x8xf32>
    %62 = vector.shape_cast %58 : vector<16x8xf32> to vector<1x16x8xf32>
    %63 = vector.shape_cast %59 : vector<16x8xf32> to vector<1x16x8xf32>
    %64 = vector.shape_cast %60 : vector<16x8xf32> to vector<1x16x8xf32>
    %65 = vector.shape_cast %61 : vector<16x8xf32> to vector<1x16x8xf32>
    %66 = tpu.concatenate %62, %63, %64, %65 in 0 : vector<1x16x8xf32>, vector<1x16x8xf32>, vector<1x16x8xf32>, vector<1x16x8xf32> -> vector<4x16x8xf32>
    %67 = tpu.transpose %47, [1, 0] : vector<16x32xf32> -> vector<32x16xf32>
    %68 = vector.shape_cast %67 : vector<32x16xf32> to vector<4x8x16xf32>
    "tpu.trace_start"() <{level = 10 : i32, message = "hnf,hfm->hnm"}> : () -> ()
    %cst_12 = arith.constant dense<0.000000e+00> : vector<4x16x16xf32>
    %69 = tpu.matmul %57, %68, %cst_12 {dimension_numbers = #tpu.dot_dimension_numbers<[2], [1], [1], [2], [0, 0, 0, 1, 1, 2], [0], [0]>} : vector<4x16x8xf32>, vector<4x8x16xf32>, vector<4x16x16xf32> -> vector<4x16x16xf32>
    "tpu.trace_stop"() : () -> ()
    %70 = vector.shape_cast %1 : vector<16x16xf32> to vector<1x16x16xf32>
    %71 = vector.broadcast %70 : vector<1x16x16xf32> to vector<4x16x16xf32>
    %72 = arith.addf %69, %71 : vector<4x16x16xf32>
    %cst_13 = arith.constant dense<0xFF800000> : vector<4x16xf32>
    %73 = vector.multi_reduction <maximumf>, %72, %cst_13 [2] : vector<4x16x16xf32> to vector<4x16xf32>
    %74 = vector.shape_cast %73 : vector<4x16xf32> to vector<4x16x1xf32>
    %75 = vector.broadcast %74 : vector<4x16x1xf32> to vector<4x16x16xf32>
    %76 = arith.subf %72, %75 : vector<4x16x16xf32>
    %77 = math.exp %76 : vector<4x16x16xf32>
    %cst_14 = arith.constant dense<0.000000e+00> : vector<4x16xf32>
    %78 = vector.multi_reduction <add>, %77, %cst_14 [2] : vector<4x16x16xf32> to vector<4x16xf32>
    %79 = vector.shape_cast %78 : vector<4x16xf32> to vector<4x16x1xf32>
    "tpu.trace_start"() <{level = 10 : i32, message = "hnm,hmf->hnf"}> : () -> ()
    %cst_15 = arith.constant dense<0.000000e+00> : vector<4x16x8xf32>
    %80 = tpu.matmul %77, %66, %cst_15 {dimension_numbers = #tpu.dot_dimension_numbers<[2], [1], [1], [2], [0, 0, 0, 1, 1, 2], [0], [0]>} : vector<4x16x16xf32>, vector<4x16x8xf32>, vector<4x16x8xf32> -> vector<4x16x8xf32>
    "tpu.trace_stop"() : () -> ()
    %81 = tpu.reciprocal %79 {approx = true} : vector<4x16x1xf32> -> vector<4x16x1xf32>
    %82 = vector.broadcast %81 : vector<4x16x1xf32> to vector<4x16x8xf32>
    %83 = arith.mulf %80, %82 : vector<4x16x8xf32>
    %84 = vector.extract_strided_slice %83 {offsets = [0, 0, 0], sizes = [1, 16, 8], strides = [1, 1, 1]} : vector<4x16x8xf32> to vector<1x16x8xf32>
    %85 = vector.shape_cast %84 : vector<1x16x8xf32> to vector<16x8xf32>
    %86 = vector.extract_strided_slice %83 {offsets = [1, 0, 0], sizes = [1, 16, 8], strides = [1, 1, 1]} : vector<4x16x8xf32> to vector<1x16x8xf32>
    %87 = vector.shape_cast %86 : vector<1x16x8xf32> to vector<16x8xf32>
    %88 = vector.extract_strided_slice %83 {offsets = [2, 0, 0], sizes = [1, 16, 8], strides = [1, 1, 1]} : vector<4x16x8xf32> to vector<1x16x8xf32>
    %89 = vector.shape_cast %88 : vector<1x16x8xf32> to vector<16x8xf32>
    %90 = vector.extract_strided_slice %83 {offsets = [3, 0, 0], sizes = [1, 16, 8], strides = [1, 1, 1]} : vector<4x16x8xf32> to vector<1x16x8xf32>
    %91 = vector.shape_cast %90 : vector<1x16x8xf32> to vector<16x8xf32>
    %92 = tpu.concatenate %85, %87, %89, %91 in 1 : vector<16x8xf32>, vector<16x8xf32>, vector<16x8xf32>, vector<16x8xf32> -> vector<16x32xf32>
    %c0_16 = arith.constant 0 : index
    %c0_17 = arith.constant 0 : index
    %93 = vector.load %arg3[%c0_16, %c0_17] : memref<32x32xf32, #tpu.memory_space<vmem>>, vector<32x32xf32>
    %cst_18 = arith.constant dense<0.000000e+00> : vector<16x32xf32>
    %94 = tpu.matmul %92, %93, %cst_18 {dimension_numbers = #tpu.dot_dimension_numbers<[1], [0], [0], [1], [0, 0, 1, 1], [], []>} : vector<16x32xf32>, vector<32x32xf32>, vector<16x32xf32> -> vector<16x32xf32>
    %95 = vector.shape_cast %6 : vector<32xf32> to vector<1x32xf32>
    %96 = vector.broadcast %95 : vector<1x32xf32> to vector<16x32xf32>
    %97 = arith.addf %94, %96 : vector<16x32xf32>
    %98 = arith.addf %97, %0 : vector<16x32xf32>
    %cst_19 = arith.constant dense<0.000000e+00> : vector<16xf32>
    %99 = vector.multi_reduction <add>, %98, %cst_19 [1] : vector<16x32xf32> to vector<16xf32>
    %100 = vector.shape_cast %99 : vector<16xf32> to vector<16x1xf32>
    %cst_20 = arith.constant 3.200000e+01 : f32
    %101 = vector.broadcast %cst_20 : f32 to vector<16x1xf32>
    %102 = arith.divf %100, %101 : vector<16x1xf32>
    %103 = vector.broadcast %102 : vector<16x1xf32> to vector<16x32xf32>
    %104 = arith.subf %98, %103 : vector<16x32xf32>
    %105 = arith.mulf %104, %104 : vector<16x32xf32>
    %cst_21 = arith.constant dense<0.000000e+00> : vector<16xf32>
    %106 = vector.multi_reduction <add>, %105, %cst_21 [1] : vector<16x32xf32> to vector<16xf32>
    %107 = vector.shape_cast %106 : vector<16xf32> to vector<16x1xf32>
    %cst_22 = arith.constant 3.200000e+01 : f32
    %108 = vector.broadcast %cst_22 : f32 to vector<16x1xf32>
    %109 = arith.divf %107, %108 : vector<16x1xf32>
    %cst_23 = arith.constant 9.99999974E-6 : f32
    %110 = vector.broadcast %cst_23 : f32 to vector<16x1xf32>
    %111 = arith.addf %109, %110 : vector<16x1xf32>
    %112 = math.rsqrt %111 : vector<16x1xf32>
    %113 = vector.broadcast %112 : vector<16x1xf32> to vector<16x32xf32>
    %114 = arith.mulf %104, %113 : vector<16x32xf32>
    %115 = vector.shape_cast %12 : vector<32xf32> to vector<1x32xf32>
    %116 = vector.broadcast %115 : vector<1x32xf32> to vector<16x32xf32>
    %117 = arith.mulf %114, %116 : vector<16x32xf32>
    %118 = vector.shape_cast %14 : vector<32xf32> to vector<1x32xf32>
    %119 = vector.broadcast %118 : vector<1x32xf32> to vector<16x32xf32>
    %120 = arith.addf %117, %119 : vector<16x32xf32>
    %c0_24 = arith.constant 0 : index
    %c0_25 = arith.constant 0 : index
    %121 = vector.load %arg4[%c0_24, %c0_25] : memref<32x64xf32, #tpu.memory_space<vmem>>, vector<32x64xf32>
    %cst_26 = arith.constant dense<0.000000e+00> : vector<16x64xf32>
    %122 = tpu.matmul %120, %121, %cst_26 {dimension_numbers = #tpu.dot_dimension_numbers<[1], [0], [0], [1], [0, 0, 1, 1], [], []>} : vector<16x32xf32>, vector<32x64xf32>, vector<16x64xf32> -> vector<16x64xf32>
    %123 = vector.shape_cast %18 : vector<64xf32> to vector<1x64xf32>
    %124 = vector.broadcast %123 : vector<1x64xf32> to vector<16x64xf32>
    %125 = arith.addf %122, %124 : vector<16x64xf32>
    %cst_27 = arith.constant 0.000000e+00 : f32
    %126 = vector.broadcast %cst_27 : f32 to vector<16x64xf32>
    %127 = arith.maximumf %125, %126 : vector<16x64xf32>
    %c0_28 = arith.constant 0 : index
    %c0_29 = arith.constant 0 : index
    %128 = vector.load %arg5[%c0_28, %c0_29] : memref<64x32xf32, #tpu.memory_space<vmem>>, vector<64x32xf32>
    %cst_30 = arith.constant dense<0.000000e+00> : vector<16x32xf32>
    %129 = tpu.matmul %127, %128, %cst_30 {dimension_numbers = #tpu.dot_dimension_numbers<[1], [0], [0], [1], [0, 0, 1, 1], [], []>} : vector<16x64xf32>, vector<64x32xf32>, vector<16x32xf32> -> vector<16x32xf32>
    %130 = vector.shape_cast %16 : vector<32xf32> to vector<1x32xf32>
    %131 = vector.broadcast %130 : vector<1x32xf32> to vector<16x32xf32>
    %132 = arith.addf %129, %131 : vector<16x32xf32>
    %133 = arith.addf %132, %98 : vector<16x32xf32>
    %c0_31 = arith.constant 0 : index
    %c0_32 = arith.constant 0 : index
    %134 = vector.load %arg7[%c0_31, %c0_32] : memref<16x32xf32, #tpu.memory_space<vmem>>, vector<16x32xf32>
    tpu.vector_store %arg7[%c0_31, %c0_32], %133 {strides = array<i32>} : memref<16x32xf32, #tpu.memory_space<vmem>>, vector<16x32xf32>,
    return
  }
}

</mosaic_0001>

<bundles_post_ra>
// kernel: transformer_encoder_layer.1
= control target key start
LH: loop header
LB: loop body
LE: loop exit
PB: predicated region body
PF: predicated region fallthrough
CT: control target
= control target key end

     0   :  { %vm32_vm0 = vcmask 261120   ;;  %s1917_s0 = inlined_call_operand.vmem [shape: f32[16,32], index: 0, kind: input, shape index: {}]   ;;  %s1918_s1 = inlined_call_operand.vmem [shape: f32[16,16], index: 1, kind: input, shape index: {}]   ;;  %s1919_s2 = inlined_call_operand.vmem [shape: f32[32,128], index: 2, kind: input, shape index: {}]   ;;  %s1920_s3 = inlined_call_operand.vmem [shape: f32[32,32], index: 3, kind: input, shape index: {}]   ;;  %s1921_s4 = inlined_call_operand.vmem [shape: f32[32,64], index: 4, kind: input, shape index: {}]   ;;  %s1922_s5 = inlined_call_operand.vmem [shape: f32[64,32], index: 5, kind: input, shape index: {}]   ;;  %s1923_s6 = inlined_call_operand.vmem [shape: f32[3,128], index: 6, kind: input, shape index: {}]   ;;  %s1924_s7 = inlined_call_operand.hbm [shape: f32[16,32], index: 7, kind: output, shape index: {}]  }
   0x1   :  { %v1715_v0 = vld [vmem:[%s1917_s0] sm:$0xff]  ;;  %v1720_v1 = vld [vmem:[%s1917_s0 + $0x8] sm:$0xff] }
   0x2   :  { %12 = vsyncpa [#allocation3], 0  ;;  %v33_v2 = vsel %vm32_vm0, %v1715_v0, 0.0  ;;  %v36_v3 = vsel %vm32_vm0, %v1720_v1, 0.0  ;;  %v60_v4 = vlaneseq  ;;  %v1731_v6 = vld [vmem:[%s1923_s6] sm:$0x7] }
   0x3   :  { %34 = vadd.xlane.f32.xlu0 %v33_v2  ;;  %s1661_s0 = smov 96   ;;  %s1662_s6 = smov 64   ;;  %v75_v19 = vld [vmem:[%s1919_s2] sm:$0xff]  ;;  %v76_v20 = vld [vmem:[%s1919_s2 + $0x8] sm:$0xff]  ;;  %v77_v22 = vld [vmem:[%s1919_s2 + $0x10] sm:$0xff]  ;;  %vm216_vm1 = vcmask 64512  }
   0x4   :  { %v1726_v5 = vshrl.u32 %v60_v4, 7  ;;  %v1509_v21 = vpack.c.bf16 %v76_v20, %v75_v19  ;;  %v78_v23 = vld [vmem:[%s1919_s2 + $0x18] sm:$0xff]  ;;  %s1663_s2 = smov 120   ;;  %s1664_s15 = smov 112   ;;  %vm533_vm2 = vcmask 130048   ;;  %vm998_vm3 = vcmask 195584  }
   0x5   :  { %v1513_v24 = vpack.c.bf16 %v78_v23, %v77_v22  ;;  %s1665_s16 = smov 104   ;;  %s1666_s24 = smov 8   ;;  %vm1227_vm4 = vcmask 523264  }
   0x6   :  { %v62_v7 = vsub.s32 1, %v1726_v5  ;;  %1510 = vmatprep.subr.bf16.mxu0 %v1509_v21  ;;  %v81_v41 = vsub.s32 0, %v1726_v5  ;;  %s1667_s29 = smov 16   ;;  %s1669_s30 = smov 32  }
   0x7   :  { %37 = vadd.xlane.f32.xlu0 %v36_v3  ;;  %1512 = vmatpush3.bf16.msra.mxu0 %v1509_v21  ;;  %s1670_s28 = smov [#allocation2]  }
   0x8   :  { %v1735_v8 = vrot.slane %v1731_v6, %v62_v7  ;;  %1514 = vmatprep.subr.bf16.mxu0 %v1513_v24  ;;  %v82_v42 = vrot.slane %v1731_v6, %v81_v41 }
   0xb   :  { %1516 = vmatpush3.bf16.msra.mxu0 %v1513_v24 }
  0x1d   :  { %65 = vrot.lane.b32.xlu0 %v1735_v8, %s1661_s0 }
  0x90   :  { %v35_v9 = vpop.xlane.xlu0 %34 }
  0x91   :  { %v40_v10 = vmul.f32 0.03125, %v35_v9 }
  0x93   :  { %v42_v11 = vsub.f32 %v1715_v0, %v40_v10  ;;  %v30_v10 = vld [vmem:[%s1918_s1 + $0x8] sm:$0xff] }
  0x94   :  { %v38_v12 = vpop.xlane.xlu0 %37 }
  0x95   :  { %v41_v13 = vmul.f32 0.03125, %v38_v12  ;;  %v44_v14 = vmul.f32 %v42_v11, %v42_v11 }
  0x97   :  { %v43_v15 = vsub.f32 %v1720_v1, %v41_v13  ;;  %v46_v16 = vsel %vm32_vm0, %v44_v14, 0.0 }
  0x98   :  { %47 = vadd.xlane.f32.xlu1 %v46_v16  ;;  %v66_v32 = vpop.permute.xlu0 %65 }
  0x99   :  { %v45_v17 = vmul.f32 %v43_v15, %v43_v15 }
  0x9b   :  { %v49_v18 = vsel %vm32_vm0, %v45_v17, 0.0 }
  0x9c   :  { %50 = vadd.xlane.f32.xlu1 %v49_v18 }
  0xad   :  { %70 = vrot.lane.b32.xlu1 %v1735_v8, %s1662_s6 }
 0x125   :  { %v48_v25 = vpop.xlane.xlu1 %47 }
 0x126   :  { %v52_v26 = vmul.f32 0.03125, %v48_v25 }
 0x128   :  { %v54_v27 = vadd.f32 1e-05, %v52_v26 }
 0x129   :  { %v51_v28 = vpop.xlane.xlu1 %50 }
 0x12a   :  { %1597 = vrsqrt.f32 %v54_v27  ;;  %v53_v29 = vmul.f32 0.03125, %v51_v28 }
 0x12c   :  { %v55_v30 = vadd.f32 1e-05, %v53_v29 }
 0x12d   :  { %v71_v34 = vpop.permute.xlu1 %70 }
 0x12e   :  { %1599 = vrsqrt.f32 %v55_v30 }
 0x134   :  { %v1598_v31 = vpop.eup %1597 }
 0x135   :  { %v58_v33 = vmul.f32 %v1598_v31, %v42_v11  ;;  %v29_v11 = vld [vmem:[%s1918_s1] sm:$0xff] }
 0x137   :  { %v68_v35 = vmul.f32 %v66_v32, %v58_v33 }
 0x138   :  { %v1600_v36 = vpop.eup %1599 }
 0x139   :  { %v59_v37 = vmul.f32 %v1600_v36, %v43_v15  ;;  %v73_v38 = vadd.f32 %v71_v34, %v68_v35 }
 0x13b   :  { %v69_v39 = vmul.f32 %v66_v32, %v59_v37  ;;  %1417 = vmatprep.mubr.msk.f32.mxu0 %vm32_vm0, %v73_v38 }
 0x13d   :  { %v74_v40 = vadd.f32 %v71_v34, %v69_v39 }
 0x13f   :  { %1418 = vmatmul.mubr.msk.f32.vlgmr.msra.gmra.mrb[0].mxu0 %vm32_vm0, %v74_v40 }
 0x212   :  { %v1419_v43 = vpop.f32.mrb[0].mxu0 }
 0x213   :  { %v155_v44 = vpop.f32.mrb[1].mxu0  ;;  %v161_v46 = vadd.f32 %v1419_v43, %v82_v42 }
 0x214   :  { %v156_v45 = vadd.f32 %v155_v44, %v82_v42 }
 0x216   :  { %166 = vrot.lane.b32.xlu0 %v156_v45, %s1663_s2  ;;  %178 = vrot.lane.b32.xlu1 %v156_v45, %s1661_s0  ;;  %v1577_v47 = vpack.i.bf16 %v161_v46, %v156_v45 }
 0x217   :  { %1422 = vmatprep.mubr.msk.f32.mxu1 %vm216_vm1, %v156_v45 }
 0x21a   :  { %170 = vrot.lane.b32.xlu0 %v156_v45, %s1664_s15  ;;  %180 = vrot.lane.b32.xlu1 %v161_v46, %s1661_s0 }
 0x21e   :  { %174 = vrot.lane.b32.xlu0 %v156_v45, %s1665_s16  ;;  %168 = vrot.lane.b32.xlu1 %v161_v46, %s1663_s2 }
 0x222   :  { %172 = vrot.lane.b32.xlu1 %v161_v46, %s1664_s15 }
 0x226   :  { %176 = vrot.lane.b32.xlu1 %v161_v46, %s1665_s16 }
 0x22a   :  { %1578 = vrot.lane.b32.xlu1 %v1577_v47, %s1662_s6 }
 0x288   :  { %v167_v48 = vpop.permute.xlu0 %166  ;;  %v179_v49 = vpop.permute.xlu1 %178 }
 0x289   :  { %184 = vxpose.xlu0.b32.start [1/2] (short) (narrow) %v179_v49, 32 }
 0x28c   :  { %v1765_v50 = vpop.permute.xlu0 %170  ;;  %v181_v51 = vpop.permute.xlu1 %180 }
 0x28d   :  { %185 = vxpose.xlu0.b32.end [2/2] (short) (narrow) %v181_v51, 32 }
 0x290   :  { %v1767_v52 = vpop.permute.xlu0 %174  ;;  %v169_v53 = vpop.permute.xlu1 %168 }
 0x291   :  { %v1582_v54 = vpack.i.bf16 %v169_v53, %v167_v48  ;;  %1437 = vmatprep.mubr.msk.f32.mxu0 %vm216_vm1, %v1767_v52 }
 0x293   :  { %1583 = vrot.lane.b32.xlu1 %v1582_v54, %s1662_s6 }
 0x294   :  { %v1772_v55 = vpop.permute.xlu1 %172 }
 0x295   :  { %v1587_v37 = vpack.i.bf16 %v1772_v55, %v1765_v50 }
 0x298   :  { %v1774_v56 = vpop.permute.xlu1 %176 }
 0x299   :  { %v1592_v33 = vpack.i.bf16 %v1774_v56, %v1767_v52 }
 0x29c   :  { %v1579_v58 = vpop.permute.xlu1 %1578 }
 0x29d   :  { %v1581_v60 = vunpack.i.h.bf16 %v1579_v58  ;;  %v1580_v61 = vunpack.i.l.bf16 %v1579_v58 }
 0x29f   :  { %v1517_v2 = vpack.c.bf16 %v1581_v60, %v1580_v61 }
 0x305   :  { %v1584_v62 = vpop.permute.xlu1 %1583 }
 0x306   :  { %v1586_v3 = vunpack.i.h.bf16 %v1584_v62  ;;  %v1585_v4 = vunpack.i.l.bf16 %v1584_v62 }
 0x308   :  { %v1521_v9 = vpack.c.bf16 %v1586_v3, %v1585_v4 }
 0x309   :  { %v200_v57 = vpop.trf.xlu0 }
 0x30a   :  { %1420 = vmatprep.subr.mxu1 %v200_v57 }
 0x30b   :  { %1421 = vmatpush3.msra.mxu1 %v200_v57 }
 0x30c   :  { %1423 = vmatmul.mubr.msk.f32.vlgmr.msra.gmra.mrb[0].mxu1 %vm216_vm1, %v161_v46 }
 0x30d   :  { %v201_v59 = vpop.trf.xlu0  ;;  %1427 = vmatprep.mubr.msk.f32.mxu1 %vm216_vm1, %v167_v48 }
 0x30e   :  { %1425 = vmatprep.subr.mxu1 %v201_v59 }
 0x30f   :  { %1426 = vmatpush3.msra.mxu1 %v201_v59 }
 0x310   :  { %1428 = vmatmul.mubr.msk.f32.vlgmr.msra.gmra.mrb[2].mxu1 %vm216_vm1, %v169_v53 }
 0x311   :  { %v202_v63 = vpop.trf.xlu0  ;;  %1432 = vmatprep.mubr.msk.f32.mxu1 %vm216_vm1, %v1765_v50 }
 0x312   :  { %1430 = vmatprep.subr.mxu1 %v202_v63 }
 0x313   :  { %1431 = vmatpush3.msra.mxu1 %v202_v63 }
 0x314   :  { %1433 = vmatmul.mubr.msk.f32.vlgmr.msra.gmra.mrb[4].mxu1 %vm216_vm1, %v1772_v55  ;;  %1518 = vmatprep.subr.bf16.mxu1 %v1517_v2 }
 0x315   :  { %v203_v7 = vpop.trf.xlu0  ;;  %1520 = vmatpush3.bf16.msra.mxu1 %v1517_v2 }
 0x316   :  { %1435 = vmatprep.subr.mxu0 %v203_v7 }
 0x317   :  { %1436 = vmatpush3.msra.mxu0 %v203_v7 }
 0x318   :  { %1438 = vmatmul.mubr.msk.f32.vlgmr.msra.gmra.mrb[2].mxu0 %vm216_vm1, %v1774_v56  ;;  %1522 = vmatprep.subr.bf16.mxu0 %v1521_v9 }
 0x319   :  { %1524 = vmatpush3.bf16.msra.mxu0 %v1521_v9 }
 0x3df   :  { %v1424_v12 = vpop.f32.mrb[0].mxu1 }
 0x3e0   :  { %v293_v13 = vadd.f32 %v1424_v12, %v30_v10  ;;  %v287_v14 = vpop.f32.mrb[1].mxu1 }
 0x3e1   :  { %v288_v15 = vadd.f32 %v287_v14, %v29_v11 }
 0x3e2   :  { %v537_v16 = vsel %vm533_vm2, %v293_v13, -inf }
 0x3e3   :  { %538 = vmax.xlane.f32.xlu0 %v537_v16  ;;  %v1429_v17 = vpop.f32.mrb[2].mxu1  ;;  %v534_v18 = vsel %vm533_vm2, %v288_v15, -inf }
 0x3e4   :  { %v372_v19 = vadd.f32 %v1429_v17, %v30_v10  ;;  %v366_v20 = vpop.f32.mrb[3].mxu1  ;;  %535 = vmax.xlane.f32.xlu1 %v534_v18 }
 0x3e5   :  { %v367_v22 = vadd.f32 %v366_v20, %v29_v11 }
 0x3e6   :  { %v543_v21 = vsel %vm533_vm2, %v372_v19, -inf }
 0x3e7   :  { %v1434_v23 = vpop.f32.mrb[4].mxu1  ;;  %v540_v27 = vsel %vm533_vm2, %v367_v22, -inf }
 0x3e8   :  { %v445_v24 = vpop.f32.mrb[5].mxu1  ;;  %544 = vmax.xlane.f32.xlu1 %v543_v21  ;;  %v451_v25 = vadd.f32 %v1434_v23, %v30_v10 }
 0x3e9   :  { %v446_v29 = vadd.f32 %v445_v24, %v29_v11 }
 0x3ea   :  { %v549_v30 = vsel %vm533_vm2, %v451_v25, -inf }
 0x3eb   :  { %v1439_v26 = vpop.f32.mrb[2].mxu0  ;;  %v546_v32 = vsel %vm533_vm2, %v446_v29, -inf }
 0x3ec   :  { %v524_v28 = vpop.f32.mrb[3].mxu0  ;;  %541 = vmax.xlane.f32.xlu1 %v540_v27  ;;  %v530_v31 = vadd.f32 %v1439_v26, %v30_v10 }
 0x3ed   :  { %v525_v34 = vadd.f32 %v524_v28, %v29_v11 }
 0x3ee   :  { %v555_v35 = vsel %vm533_vm2, %v530_v31, -inf }
 0x3ef   :  { %v552_v36 = vsel %vm533_vm2, %v525_v34, -inf }
 0x3f0   :  { %550 = vmax.xlane.f32.xlu1 %v549_v30 }
 0x3f4   :  { %547 = vmax.xlane.f32.xlu1 %v546_v32 }
 0x3f8   :  { %556 = vmax.xlane.f32.xlu1 %v555_v35 }
 0x3f9   :  { %1593 = vrot.lane.b32.xlu0 %v1592_v33, %s1662_s6 }
 0x3fc   :  { %553 = vmax.xlane.f32.xlu1 %v552_v36 }
 0x40d   :  { %1588 = vrot.lane.b32.xlu1 %v1587_v37, %s1662_s6 }
 0x470   :  { %v539_v38 = vpop.xlane.xlu0 %538 }
 0x471   :  { %v559_v39 = vsub.f32 %v293_v13, %v539_v38  ;;  %v536_v40 = vpop.xlane.xlu1 %535 }
 0x472   :  { %v558_v41 = vsub.f32 %v288_v15, %v536_v40  ;;  %v1002_v40 = vld [vmem:[%s1920_s3 + $0x8] sm:$0xff] }
 0x473   :  { %v568_v42 = vmul.f32 1.442695, %v559_v39  ;;  %v1001_v39 = vld [vmem:[%s1920_s3] sm:$0xff] }
 0x474   :  { %v566_v43 = vmul.f32 1.442695, %v558_v41  ;;  %v1594_v44 = vpop.permute.xlu0 %1593 }
 0x475   :  { %v1596_v45 = vunpack.i.h.bf16 %v1594_v44  ;;  %v1595_v46 = vunpack.i.l.bf16 %v1594_v44  ;;  %v545_v47 = vpop.xlane.xlu1 %544  ;;  %v1004_v44 = vld [vmem:[%s1920_s3 + $0x18] sm:$0xff] }
 0x476   :  { %1601 = vpow2.f32 %v566_v43  ;;  %v561_v48 = vsub.f32 %v372_v19, %v545_v47  ;;  %v1003_v43 = vld [vmem:[%s1920_s3 + $0x10] sm:$0xff]  ;;  %s1668_s3 = smov 24  }
 0x477   :  { %1603 = vpow2.f32 %v568_v42  ;;  %v1529_v49 = vpack.c.bf16 %v1596_v45, %v1595_v46  ;;  %v1533_v42 = vpack.c.bf16 %v1002_v40, %v1001_v39  ;;  %v1537_v45 = vpack.c.bf16 %v1004_v44, %v1003_v43  ;;  %v1127_v39 = vld [vmem:[%s1921_s4 + $0x10] sm:$0xff]  ;;  %v1217_v40 = vld [vmem:[%s1922_s5 + $0x8] sm:$0xff]  ;;  %v1219_v43 = vld [vmem:[%s1922_s5 + $0x18] sm:$0xff] }
 0x478   :  { %v572_v51 = vmul.f32 1.442695, %v561_v48 }
 0x479   :  { %1530 = vmatprep.subr.bf16.mxu0 %v1529_v49  ;;  %v542_v52 = vpop.xlane.xlu1 %541 }
 0x47a   :  { %1605 = vpow2.f32 %v572_v51  ;;  %v560_v50 = vsub.f32 %v367_v22, %v542_v52 }
 0x47c   :  { %v570_v53 = vmul.f32 1.442695, %v560_v50 }
 0x47d   :  { %v551_v54 = vpop.xlane.xlu1 %550 }
 0x47e   :  { %1607 = vpow2.f32 %v570_v53  ;;  %v563_v55 = vsub.f32 %v451_v25, %v551_v54 }
 0x480   :  { %v1602_v56 = vpop.eup %1601  ;;  %v576_v57 = vmul.f32 1.442695, %v563_v55 }
 0x481   :  { %v1604_v58 = vpop.eup %1603  ;;  %1444 = vmatprep.mubr.msk.f32.mxu1 %vm533_vm2, %v1602_v56  ;;  %v548_v59 = vpop.xlane.xlu1 %547  ;;  %v582_v9 = vsel %vm533_vm2, %v1602_v56, 0.0 }
 0x482   :  { %1609 = vpow2.f32 %v576_v57  ;;  %v562_v60 = vsub.f32 %v446_v29, %v548_v59  ;;  %1445 = vmatmul.mubr.msk.f32.vlgmr.msra.gmra.mrb[6].mxu1 %vm533_vm2, %v1604_v58  ;;  %v585_v26 = vsel %vm533_vm2, %v1604_v58, 0.0 }
 0x484   :  { %v1606_v61 = vpop.eup %1605  ;;  %v574_v62 = vmul.f32 1.442695, %v562_v60 }
 0x485   :  { %v557_v63 = vpop.xlane.xlu1 %556  ;;  %v591_v2 = vsel %vm533_vm2, %v1606_v61, 0.0 }
 0x486   :  { %1611 = vpow2.f32 %v574_v62  ;;  %592 = vadd.xlane.f32.xlu0 %v591_v2  ;;  %v565_v3 = vsub.f32 %v530_v31, %v557_v63 }
 0x488   :  { %v1608_v4 = vpop.eup %1607  ;;  %v580_v12 = vmul.f32 1.442695, %v565_v3 }
 0x489   :  { %1451 = vmatprep.mubr.msk.f32.mxu0 %vm533_vm2, %v1608_v4  ;;  %v554_v7 = vpop.xlane.xlu1 %553  ;;  %v588_v10 = vsel %vm533_vm2, %v1608_v4, 0.0 }
 0x48a   :  { %v564_v11 = vsub.f32 %v525_v34, %v554_v7  ;;  %583 = vadd.xlane.f32.xlu0 %v582_v9  ;;  %1452 = vmatmul.mubr.msk.f32.vlgmr.msra.gmra.mrb[4].mxu0 %vm533_vm2, %v1606_v61 }
 0x48b   :  { %1532 = vmatpush3.bf16.msra.mxu0 %v1529_v49  ;;  %589 = vadd.xlane.f32.xlu1 %v588_v10 }
 0x48c   :  { %v1610_v13 = vpop.eup %1609  ;;  %v578_v14 = vmul.f32 1.442695, %v564_v11  ;;  %1534 = vmatprep.subr.bf16.mxu0 %v1533_v42 }
 0x48d   :  { %v1589_v15 = vpop.permute.xlu1 %1588  ;;  %v597_v16 = vsel %vm533_vm2, %v1610_v13, 0.0 }
 0x48e   :  { %1613 = vpow2.f32 %v578_v14  ;;  %v1591_v17 = vunpack.i.h.bf16 %v1589_v15  ;;  %v1590_v18 = vunpack.i.l.bf16 %v1589_v15 }
 0x48f   :  { %1615 = vpow2.f32 %v580_v12  ;;  %598 = vadd.xlane.f32.xlu1 %v597_v16 }
 0x490   :  { %v1612_v19 = vpop.eup %1611  ;;  %v1525_v20 = vpack.c.bf16 %v1591_v17, %v1590_v18 }
 0x491   :  { %1458 = vmatprep.mubr.msk.f32.mxu1 %vm533_vm2, %v1612_v19  ;;  %v594_v21 = vsel %vm533_vm2, %v1612_v19, 0.0 }
 0x492   :  { %1526 = vmatprep.subr.bf16.mxu1 %v1525_v20 }
 0x493   :  { %595 = vadd.xlane.f32.xlu1 %v594_v21  ;;  %1528 = vmatpush3.bf16.msra.mxu1 %v1525_v20 }
 0x496   :  { %1459 = vmatmul.mubr.msk.f32.vlgmr.msra.gmra.mrb[8].mxu1 %vm533_vm2, %v1610_v13 }
 0x498   :  { %v1614_v22 = vpop.eup %1613 }
 0x499   :  { %v1616_v23 = vpop.eup %1615  ;;  %1465 = vmatprep.mubr.msk.f32.mxu0 %vm533_vm2, %v1614_v22  ;;  %v600_v24 = vsel %vm533_vm2, %v1614_v22, 0.0 }
 0x49a   :  { %1466 = vmatmul.mubr.msk.f32.vlgmr.msra.gmra.mrb[6].mxu0 %vm533_vm2, %v1616_v23  ;;  %601 = vadd.xlane.f32.xlu1 %v600_v24  ;;  %v603_v25 = vsel %vm533_vm2, %v1616_v23, 0.0 }
 0x49b   :  { %1536 = vmatpush3.bf16.msra.mxu0 %v1533_v42 }
 0x49c   :  { %1538 = vmatprep.subr.bf16.mxu0 %v1537_v45 }
 0x49e   :  { %604 = vadd.xlane.f32.xlu1 %v603_v25 }
 0x49f   :  { %1540 = vmatpush3.bf16.msra.mxu0 %v1537_v45  ;;  %v1220_v45 = vld [vmem:[%s1922_s5 + $0x20] sm:$0xff] }
 0x4a2   :  { %586 = vadd.xlane.f32.xlu1 %v585_v26 }
 0x513   :  { %v593_v28 = vpop.xlane.xlu0 %592 }
 0x514   :  { %1617 = vrcp.f32 %v593_v28 }
 0x517   :  { %v584_v59 = vpop.xlane.xlu0 %583 }
 0x518   :  { %v590_v27 = vpop.xlane.xlu1 %589 }
 0x519   :  { %1619 = vrcp.f32 %v590_v27 }
 0x51c   :  { %v599_v29 = vpop.xlane.xlu1 %598 }
 0x51d   :  { %1621 = vrcp.f32 %v599_v29 }
 0x51e   :  { %v1618_v33 = vpop.eup %1617 }
 0x520   :  { %v596_v32 = vpop.xlane.xlu1 %595 }
 0x521   :  { %1623 = vrcp.f32 %v596_v32 }
 0x523   :  { %v1620_v35 = vpop.eup %1619 }
 0x527   :  { %v602_v36 = vpop.xlane.xlu1 %601  ;;  %v1622_v47 = vpop.eup %1621 }
 0x528   :  { %1625 = vrcp.f32 %v602_v36  ;;  %v1126_v36 = vld [vmem:[%s1921_s4 + $0x8] sm:$0xff] }
 0x52b   :  { %v605_v46 = vpop.xlane.xlu1 %604  ;;  %v1624_v52 = vpop.eup %1623 }
 0x52c   :  { %1627 = vrcp.f32 %v605_v46  ;;  %v1221_v46 = vld [vmem:[%s1922_s5 + $0x28] sm:$0xff] }
 0x52d   :  { %1629 = vrcp.f32 %v584_v59 }
 0x52f   :  { %v587_v60 = vpop.xlane.xlu1 %586 }
 0x530   :  { %1631 = vrcp.f32 %v587_v60 }
 0x532   :  { %v1626_v53 = vpop.eup %1625 }
 0x536   :  { %v1628_v57 = vpop.eup %1627 }
 0x537   :  { %v1630_v63 = vpop.eup %1629 }
 0x53a   :  { %v1632_v4 = vpop.eup %1631 }
 0x555   :  { %v1446_v30 = vpop.f32.mrb[6].mxu1 }
 0x556   :  { %v684_v31 = vpop.f32.mrb[7].mxu1  ;;  %v963_v10 = vmul.f32 %v1632_v4, %v1446_v30 }
 0x557   :  { %v962_v3 = vmul.f32 %v1630_v63, %v684_v31  ;;  %v1222_v63 = vld [vmem:[%s1922_s5 + $0x30] sm:$0xff] }
 0x55d   :  { %v1453_v34 = vpop.f32.mrb[4].mxu0 }
 0x55e   :  { %v965_v37 = vmul.f32 %v1618_v33, %v1453_v34  ;;  %v771_v38 = vpop.f32.mrb[5].mxu0  ;;  %v1121_v34 = vsub.s32 2, %v1726_v5  ;;  %v1128_v5 = vld [vmem:[%s1921_s4 + $0x18] sm:$0xff] }
 0x55f   :  { %v964_v41 = vmul.f32 %v1620_v35, %v771_v38  ;;  %v1125_v35 = vld [vmem:[%s1921_s4] sm:$0xff] }
 0x560   :  { %974 = vrot.lane.b32.xlu1 %v965_v37, %s1666_s24  ;;  %v1541_v37 = vpack.c.bf16 %v1126_v36, %v1125_v35  ;;  %v1122_v38 = vrot.slane %v1731_v6, %v1121_v34  ;;  %v1216_v6 = vld [vmem:[%s1922_s5] sm:$0xff] }
 0x561   :  { %972 = vrot.lane.b32.xlu0 %v964_v41, %s1666_s24  ;;  %v1218_v41 = vld [vmem:[%s1922_s5 + $0x10] sm:$0xff]  ;;  %v1549_v42 = vpack.c.bf16 %v1217_v40, %v1216_v6 }
 0x562   :  { %1542 = vmatprep.subr.bf16.mxu0 %v1541_v37  ;;  %v1553_v44 = vpack.c.bf16 %v1219_v43, %v1218_v41 }
 0x563   :  { %1550 = vmatprep.subr.bf16.mxu1 %v1549_v42 }
 0x564   :  { %1552 = vmatpush3.bf16.msra.mxu1 %v1549_v42 }
 0x565   :  { %1554 = vmatprep.subr.bf16.mxu1 %v1553_v44 }
 0x568   :  { %1556 = vmatpush3.bf16.msra.mxu1 %v1553_v44 }
 0x569   :  { %v1460_v48 = vpop.f32.mrb[8].mxu1 }
 0x56a   :  { %v967_v49 = vmul.f32 %v1622_v47, %v1460_v48  ;;  %v858_v51 = vpop.f32.mrb[9].mxu1  ;;  %v1557_v47 = vpack.c.bf16 %v1221_v46, %v1220_v45 }
 0x56b   :  { %v966_v54 = vmul.f32 %v1624_v52, %v858_v51 }
 0x56c   :  { %982 = vrot.lane.b32.xlu1 %v967_v49, %s1667_s29  ;;  %1558 = vmatprep.subr.bf16.mxu1 %v1557_v47 }
 0x56d   :  { %v1467_v50 = vpop.f32.mrb[6].mxu0  ;;  %1560 = vmatpush3.bf16.msra.mxu1 %v1557_v47 }
 0x56e   :  { %v945_v55 = vpop.f32.mrb[7].mxu0  ;;  %v969_v58 = vmul.f32 %v1628_v57, %v1467_v50 }
 0x56f   :  { %v968_v56 = vmul.f32 %v1626_v53, %v945_v55 }
 0x570   :  { %980 = vrot.lane.b32.xlu1 %v966_v54, %s1667_s29  ;;  %s1318_s29 = sshll.u32 %s1670_s28, 4  ;;  %s1319_s29 = int_to_ptr.vmem [resolvable:$true] %s1318_s29 }
 0x571   :  { %988 = vrot.lane.b32.xlu0 %v968_v56, %s1668_s3  ;;  %p1642_p1 = scmp.lt.s32.totalorder %s1319_s29, %s1319_s29 }
 0x574   :  { %990 = vrot.lane.b32.xlu1 %v969_v58, %s1668_s3 }
 0x5d2   :  { %v975_v61 = vpop.permute.xlu1 %974 }
 0x5d3   :  { %v973_v2 = vpop.permute.xlu0 %972  ;;  %v995_v14 = vsel %vm216_vm1, %v963_v10, %v975_v61 }
 0x5d4   :  { %v994_v7 = vsel %vm216_vm1, %v962_v3, %v973_v2  ;;  %v1223_v2 = vld [vmem:[%s1922_s5 + $0x38] sm:$0xff]  ;;  %s1637_s5 = scalar_lea.vmem %s1319_s29, 256 }
 0x5d5   :  { %v1561_v3 = vpack.c.bf16 %v1223_v2, %v1222_v63  ;;  %p1638_p0 = scmp.ne.s32.totalorder %s1319_s29, %s1637_s5  ;;  %p1643_p2 = scmp.lt.s32.totalorder %s1637_s5, %s1637_s5 }
 0x5d7   :  { %1562 = vmatprep.subr.bf16.mxu1 %v1561_v3  ;;  %p1644_p3 = por %p1643_p2, %p1642_p1 }
 0x5d8   :  { %1564 = vmatpush3.bf16.msra.mxu1 %v1561_v3 }
 0x5d9   :  { %p1645_p4 = pnand %p1644_p3, %p1638_p0 }
 0x5de   :  { %v983_v62 = vpop.permute.xlu1 %982 }
 0x5df   :  { %v997_v15 = vsel %vm533_vm2, %v995_v14, %v983_v62 }
 0x5e2   :  { %v981_v9 = vpop.permute.xlu1 %980 }
 0x5e3   :  { %v996_v11 = vsel %vm533_vm2, %v994_v7, %v981_v9  ;;  %v989_v12 = vpop.permute.xlu0 %988 }
 0x5e4   :  { %v999_v13 = vsel %vm998_vm3, %v996_v11, %v989_v12 }
 0x5e5   :  { %1476 = vmatprep.mubr.msk.f32.mxu0 %vm32_vm0, %v999_v13 }
 0x5e6   :  { %v991_v16 = vpop.permute.xlu1 %990 }
 0x5e7   :  { %v1000_v17 = vsel %vm998_vm3, %v997_v15, %v991_v16 }
 0x5e8   :  { %1477 = vmatmul.mubr.msk.f32.vlgmr.msra.gmra.mrb[8].mxu0 %vm32_vm0, %v1000_v17 }
 0x5e9   :  { %1544 = vmatpush3.bf16.msra.mxu0 %v1541_v37 }
 0x6bb   :  { %v1478_v18 = vpop.f32.mrb[8].mxu0 }
 0x6bc   :  { %v1083_v19 = vadd.f32 %v1478_v18, %v1735_v8  ;;  %v1077_v20 = vpop.f32.mrb[9].mxu0 }
 0x6bd   :  { %v1078_v21 = vadd.f32 %v1077_v20, %v1735_v8 }
 0x6be   :  { %v1844_v22 = vadd.f32 %v1083_v19, %v1720_v1 }
 0x6bf   :  { %v1847_v23 = vadd.f32 %v1078_v21, %v1715_v0 }
 0x6c0   :  { %v1091_v24 = vsel %vm32_vm0, %v1844_v22, 0.0 }
 0x6c1   :  { %1092 = vadd.xlane.f32.xlu1 %v1091_v24  ;;  %v1088_v25 = vsel %vm32_vm0, %v1847_v23, 0.0 }
 0x6c2   :  { %1089 = vadd.xlane.f32.xlu0 %v1088_v25 }
 0x6d2   :  { %1130 = vrot.lane.b32.xlu1 %v1122_v38, %s1662_s6 }
 0x6d6   :  { %1224 = vrot.lane.b32.xlu1 %v1122_v38, %s1661_s0 }
 0x74e   :  { %v1093_v26 = vpop.xlane.xlu1 %1092 }
 0x74f   :  { %v1095_v27 = vmul.f32 0.03125, %v1093_v26  ;;  %v1090_v28 = vpop.xlane.xlu0 %1089 }
 0x750   :  { %v1094_v29 = vmul.f32 0.03125, %v1090_v28 }
 0x751   :  { %v1097_v30 = vsub.f32 %v1844_v22, %v1095_v27 }
 0x752   :  { %v1096_v1 = vsub.f32 %v1847_v23, %v1094_v29  ;;  %v1131_v4 = vpop.permute.xlu1 %1130 }
 0x753   :  { %v1099_v31 = vmul.f32 %v1097_v30, %v1097_v30 }
 0x754   :  { %v1098_v32 = vmul.f32 %v1096_v1, %v1096_v1 }
 0x755   :  { %v1103_v0 = vsel %vm32_vm0, %v1099_v31, 0.0 }
 0x756   :  { %1104 = vadd.xlane.f32.xlu0 %v1103_v0  ;;  %v1100_v33 = vsel %vm32_vm0, %v1098_v32, 0.0  ;;  %v1225_v14 = vpop.permute.xlu1 %1224 }
 0x75a   :  { %1101 = vadd.xlane.f32.xlu0 %v1100_v33 }
 0x770   :  { %1114 = vrot.lane.b32.xlu0 %v1735_v8, %s1669_s30  ;;  %v1545_v8 = vpack.c.bf16 %v1128_v5, %v1127_v39 }
 0x772   :  { %1546 = vmatprep.subr.bf16.mxu0 %v1545_v8 }
 0x773   :  { %1548 = vmatpush3.bf16.msra.mxu0 %v1545_v8 }
 0x7e3   :  { %v1105_v48 = vpop.xlane.xlu0 %1104 }
 0x7e4   :  { %v1107_v49 = vmul.f32 0.03125, %v1105_v48 }
 0x7e6   :  { %v1109_v51 = vadd.f32 1e-05, %v1107_v49 }
 0x7e7   :  { %v1102_v52 = vpop.xlane.xlu0 %1101 }
 0x7e8   :  { %1633 = vrsqrt.f32 %v1109_v51  ;;  %v1106_v50 = vmul.f32 0.03125, %v1102_v52 }
 0x7ea   :  { %v1108_v53 = vadd.f32 1e-05, %v1106_v50 }
 0x7eb   :  { %v1115_v56 = vpop.permute.xlu0 %1114 }
 0x7ec   :  { %1635 = vrsqrt.f32 %v1108_v53 }
 0x7f2   :  { %v1634_v54 = vpop.eup %1633 }
 0x7f3   :  { %v1113_v55 = vmul.f32 %v1634_v54, %v1097_v30 }
 0x7f5   :  { %v1118_v59 = vmul.f32 %v1115_v56, %v1113_v55 }
 0x7f6   :  { %v1636_v57 = vpop.eup %1635 }
 0x7f7   :  { %v1112_v58 = vmul.f32 %v1636_v57, %v1096_v1  ;;  %v1124_v62 = vadd.f32 %v1122_v38, %v1118_v59 }
 0x7f9   :  { %v1117_v60 = vmul.f32 %v1115_v56, %v1112_v58 }
 0x7fb   :  { %v1123_v61 = vadd.f32 %v1122_v38, %v1117_v60 }
 0x7fd   :  { %1487 = vmatprep.mubr.msk.f32.mxu0 %vm32_vm0, %v1123_v61 }
 0x7fe   :  { %1488 = vmatmul.mubr.msk.f32.vlgmr.msra.gmra.mrb[10].mxu0 %vm32_vm0, %v1124_v62 }
 0x8d1   :  { %v1489_v7 = vpop.f32.mrb[10].mxu0 }
 0x8d2   :  { %v1211_v9 = vadd.f32 %v1489_v7, %v1131_v4  ;;  %v1205_v10 = vpop.f32.mrb[11].mxu0 }
 0x8d3   :  { %v1206_v11 = vadd.f32 %v1205_v10, %v1131_v4 }
 0x8d4   :  { %v1215_v13 = vmax.f32 %v1211_v9, 0.0 }
 0x8d5   :  { %v1214_v12 = vmax.f32 %v1206_v11, 0.0 }
 0x8d7   :  { %1506 = vmatprep.mubr.msk.f32.mxu1 %vm1227_vm4, %v1214_v12 }
 0x8d8   :  { %1507 = vmatmul.mubr.msk.f32.vlgmr.msra.gmra.mrb[10].mxu1 %vm1227_vm4, %v1215_v13 }
 0x9ab   :  { %v1508_v15 = vpop.f32.mrb[10].mxu1 }
 0x9ac   :  { %v1306_v16 = vadd.f32 %v1508_v15, %v1225_v14  ;;  %v1300_v17 = vpop.f32.mrb[11].mxu1 }
 0x9ad   :  { %v1301_v18 = vadd.f32 %v1300_v17, %v1225_v14 }
 0x9ae   :  { %v1310_v19 = vadd.f32 %v1306_v16, %v1844_v22 }
 0x9af   :  { %v1309_v20 = vadd.f32 %v1301_v18, %v1847_v23 }
 0x9b0   :  { %1312 = vst.msk [vmem:[#allocation2 + $0x8] sm:$0xff] %vm32_vm0, %v1310_v19 }
 0x9b1   :  { %1311 = vst.msk [vmem:[#allocation2] sm:$0xff] %vm32_vm0, %v1309_v20 }
 0x9b2   :  { %1648 = shalt.err (!%p1645_p4)
}
 0x9b3   :  { %s1649_s8 = scalar_lea.hbm %s1924_s7, 256 }
 0x9b4   :  { %p1650_p5 = scmp.ne.s32.totalorder %s1924_s7, %s1649_s8  ;;  %p1653_p6 = scmp.lt.u32.totalorder %s1649_s8, %s1924_s7 }
 0x9b6   :  { %p1655_p7 = pnand %p1653_p6, %p1650_p5 }
 0x9b8   :  { %1658 = shalt.err (!%p1655_p7)
}
 0x9b9   :  { %s1671_s13 = smov 128  }
 0x9ba   :  { %1324 = dma.vmem_to_hbm [thread:$0]  %s1319_s29, 256, %s1924_s7, [#allocation3], %s1671_s13, %s1671_s13, %s1666_s24  }
 0x9bb   :  { %1659 = dma.done.wait [#allocation3], 256  }
 0x9bc   :  { %1660 = vsyncadd [#allocation3], 4294967040 }
 0x9bd   :  { %1328 = vsyncpa [#allocation3], 1 }

</bundles_post_ra>
